<compile_context>
chip_gen: v7x
topology: tpu7x:2x2x1
jax: 0.10.0
libtpu: 0.0.40
codegen_flags: <defaults>
</compile_context>

<pallas_src>
import jax
import jax.numpy as jnp
from jax.experimental import pallas as pl
from jax.experimental.pallas import tpu as pltpu

_LANE = 512                       # lane-dense last dim (multiple of 128)
_TARGET_BLOCK_BYTES = 2 * 1024 * 1024  # ~2 MiB per buffer: double-buffers on all gens


def _make_clamp_kernel(lo, hi):
    def kernel(x_ref, o_ref):
        x = x_ref[...]
        o_ref[...] = jnp.clip(x, jnp.asarray(lo, x.dtype), jnp.asarray(hi, x.dtype))
    return kernel


def clamp_pallas(x, min_val=0.0, max_val=1.0):
    """torch.clamp(x, min, max) equivalent, elementwise, any shape/dtype."""
    orig_shape = x.shape
    dtype = x.dtype
    n = x.size
    if n == 0:
        return x

    itemsize = jnp.dtype(dtype).itemsize
    # packed-sublane multiple: 8 for 32-bit, 16 for 16-bit, 32 for 8-bit dtypes
    sub = {4: 8, 2: 16, 1: 32}.get(itemsize, 8)

    # Row-block sized at ~2 MiB per buffer, rounded to the sublane-pack multiple,
    # shrunk for small inputs so we never pad more than one block.
    rows_min = pl.cdiv(n, _LANE)
    target_rows = max(sub, (_TARGET_BLOCK_BYTES // (_LANE * itemsize)) // sub * sub)
    block_rows = min(target_rows, pl.cdiv(rows_min, sub) * sub)
    block_elems = block_rows * _LANE

    n_grid = pl.cdiv(n, block_elems)
    rows_p = n_grid * block_rows
    n_pad = rows_p * _LANE - n          # tail pad only (< one block), 0 if aligned

    flat = x.reshape(-1)
    if n_pad:
        flat = jnp.pad(flat, (0, n_pad))
    x2d = flat.reshape(rows_p, _LANE)

    out2d = pl.pallas_call(
        _make_clamp_kernel(min_val, max_val),
        out_shape=jax.ShapeDtypeStruct((rows_p, _LANE), dtype),
        grid=(n_grid,),
        in_specs=[pl.BlockSpec((block_rows, _LANE), lambda i: (i, 0))],
        out_specs=pl.BlockSpec((block_rows, _LANE), lambda i: (i, 0)),
        compiler_params=pltpu.CompilerParams(
            dimension_semantics=("parallel",)),
    )(x2d)

    out_flat = out2d.reshape(-1)
    if n_pad:
        out_flat = out_flat[:n]
    return out_flat.reshape(orig_shape)


if __name__ == "__main__":
    key = jax.random.PRNGKey(0)

    # NCHW input, consistent with a segmentation head output.
    x = jax.random.normal(key, (2, 4, 16, 16), dtype=jnp.float32) * 2.0
    y = jax.block_until_ready(clamp_pallas(x, min_val=0.0, max_val=1.0))
    y_ref = jnp.clip(x, 0.0, 1.0)
    assert y.shape == x.shape and y.dtype == x.dtype
    assert jnp.allclose(y, y_ref), "f32 mismatch vs jnp.clip reference"

    # Non-aligned shape exercises the tail-only padding path.
    x_odd = jax.random.normal(jax.random.PRNGKey(1), (3, 5, 7), dtype=jnp.float32) * 3.0
    y_odd = jax.block_until_ready(clamp_pallas(x_odd, 0.0, 1.0))
    assert jnp.allclose(y_odd, jnp.clip(x_odd, 0.0, 1.0)), "odd-shape mismatch"

    # bf16 path exercises the packed-sublane (16-row) alignment.
    x_bf16 = (jax.random.normal(jax.random.PRNGKey(2), (2, 4, 16, 16)) * 2.0).astype(jnp.bfloat16)
    y_bf16 = jax.block_until_ready(clamp_pallas(x_bf16, 0.0, 1.0))
    assert y_bf16.dtype == jnp.bfloat16
    assert jnp.allclose(y_bf16.astype(jnp.float32),
                        jnp.clip(x_bf16, 0.0, 1.0).astype(jnp.float32)), "bf16 mismatch"

    print("KERNEL_OK")
</pallas_src>

<mosaic_0001>
module attributes {stable_mosaic.version = 11 : i64} {
  func.func @kernel(%arg0: i32, %arg1: memref<8x512xf32, #tpu.memory_space<vmem>>, %arg2: memref<8x512xf32, #tpu.memory_space<vmem>>) attributes {dimension_semantics = [#tpu.dimension_semantics<parallel>], iteration_bounds = array<i64: 1>, scalar_prefetch = 0 : i64, scratch_operands = 0 : i64, tpu.core_type = #tpu.core_type<tc>, window_params = [{transform_indices = @transform_0, window_bounds = array<i64: 8, 512>}, {transform_indices = @transform_1, window_bounds = array<i64: 8, 512>}]} {
    %c0 = arith.constant 0 : index
    %c0_0 = arith.constant 0 : index
    %0 = vector.load %arg1[%c0, %c0_0] : memref<8x512xf32, #tpu.memory_space<vmem>>, vector<8x512xf32>
    %cst = arith.constant 0.000000e+00 : f32
    %cst_1 = arith.constant 1.000000e+00 : f32
    %1 = vector.broadcast %cst : f32 to vector<8x512xf32>
    %2 = arith.maximumf %1, %0 : vector<8x512xf32>
    %3 = vector.broadcast %cst_1 : f32 to vector<8x512xf32>
    %4 = arith.minimumf %3, %2 : vector<8x512xf32>
    %c0_2 = arith.constant 0 : index
    %c0_3 = arith.constant 0 : index
    %5 = vector.load %arg2[%c0_2, %c0_3] : memref<8x512xf32, #tpu.memory_space<vmem>>, vector<8x512xf32>
    tpu.vector_store %arg2[%c0_2, %c0_3], %4 {strides = array<i32>} : memref<8x512xf32, #tpu.memory_space<vmem>>, vector<8x512xf32>,
    return
  }
  func.func @transform_0(%arg0: i32) -> (i32, i32) {
    %c0_i32 = arith.constant 0 : i32
    %c0_i32_0 = arith.constant 0 : i32
    return %arg0, %c0_i32 : i32, i32
  }
  func.func @transform_1(%arg0: i32) -> (i32, i32) {
    %c0_i32 = arith.constant 0 : i32
    %c0_i32_0 = arith.constant 0 : i32
    return %arg0, %c0_i32 : i32, i32
  }
}

</mosaic_0001>

<bundles_post_ra>
// kernel: tpu_custom_call.1
= control target key start
LH: loop header
LB: loop body
LE: loop exit
PB: predicated region body
PF: predicated region fallthrough
CT: control target
= control target key end

     0   :  { %6 = vsyncpa [#allocation3], 0  ;;  %s138_s0 = inlined_call_operand.hbm [shape: f32[8,512], index: 0, kind: input, shape index: {}]   ;;  %s139_s1 = inlined_call_operand.hbm [shape: f32[8,512], index: 1, kind: output, shape index: {}]  }
   0x1   :  { %7 = vsyncpa [#allocation4], 0  ;;  %s102_s6 = smov [#allocation2]   ;;  %s54_s10 = scalar_lea.hbm %s138_s0, 512 }
   0x2   :  { %s14_s7 = sshll.u32 %s102_s6, 4  ;;  %p55_p0 = scmp.ne.s32.totalorder %s138_s0, %s54_s10  ;;  %s15_s7 = int_to_ptr.vmem [resolvable:$true] %s14_s7 }
   0x3   :  { %p58_p1 = scmp.lt.u32.totalorder %s54_s10, %s138_s0 }
   0x5   :  { %p60_p2 = pnand %p58_p1, %p55_p0 }
   0x7   :  { %63 = shalt.err (!%p60_p2)
}
   0x8   :  { %s64_s15 = scalar_lea.vmem %s15_s7, 512  ;;  %p69_p4 = scmp.lt.s32.totalorder %s15_s7, %s15_s7 }
   0x9   :  { %p65_p3 = scmp.ne.s32.totalorder %s15_s7, %s64_s15  ;;  %p70_p5 = scmp.lt.s32.totalorder %s64_s15, %s64_s15 }
   0xb   :  { %p71_p6 = por %p70_p5, %p69_p4 }
   0xd   :  { %p72_p7 = pnand %p71_p6, %p65_p3 }
   0xf   :  { %75 = shalt.err (!%p72_p7)
}
  0x10   :  { %17 = dma.hbm_to_vmem [thread:$0]  %s138_s0, 512, %s15_s7, [#allocation3]  }
  0x11   :  { %98 = dma.done.wait [#allocation3], 512  }
  0x12   :  { %99 = vsyncadd [#allocation3], 4294966784  ;;  %v21_v0 = vld [vmem:[#allocation2] sm:$0xff]  ;;  %v22_v1 = vld [vmem:[#allocation2 + $0x8] sm:$0xff]  ;;  %s103_s18 = smov [#allocation5]  }
  0x13   :  { %v23_v2 = vld [vmem:[#allocation2 + $0x10] sm:$0xff]  ;;  %v25_v3 = vmax.f32 %v21_v0, 0.0  ;;  %v26_v4 = vmax.f32 %v22_v1, 0.0  ;;  %v24_v6 = vld [vmem:[#allocation2 + $0x18] sm:$0xff]  ;;  %s43_s19 = sshll.u32 %s103_s18, 4  ;;  %s44_s19 = int_to_ptr.vmem [resolvable:$true] %s43_s19 }
  0x14   :  { %v27_v5 = vmax.f32 %v23_v2, 0.0  ;;  %v28_v7 = vmax.f32 %v24_v6, 0.0  ;;  %s76_s0 = scalar_lea.vmem %s44_s19, 512  ;;  %p81_p9 = scmp.lt.s32.totalorder %s44_s19, %s44_s19 }
  0x15   :  { %v29_v8 = vmin.f32 %v25_v3, 1.0  ;;  %v30_v9 = vmin.f32 %v26_v4, 1.0  ;;  %p77_p8 = scmp.ne.s32.totalorder %s44_s19, %s76_s0  ;;  %p82_p10 = scmp.lt.s32.totalorder %s76_s0, %s76_s0 }
  0x16   :  { %v31_v10 = vmin.f32 %v27_v5, 1.0  ;;  %v32_v11 = vmin.f32 %v28_v7, 1.0 }
  0x17   :  { %33 = vst [vmem:[#allocation5] sm:$0xff] %v29_v8  ;;  %34 = vst [vmem:[#allocation5 + $0x8] sm:$0xff] %v30_v9  ;;  %p83_p11 = por %p82_p10, %p81_p9 }
  0x18   :  { %35 = vst [vmem:[#allocation5 + $0x10] sm:$0xff] %v31_v10  ;;  %36 = vst [vmem:[#allocation5 + $0x18] sm:$0xff] %v32_v11 }
  0x19   :  { %p84_p12 = pnand %p83_p11, %p77_p8 }
  0x1b   :  { %87 = shalt.err (!%p84_p12)
}
  0x1c   :  { %s88_s22 = scalar_lea.hbm %s139_s1, 512 }
  0x1d   :  { %p89_p13 = scmp.ne.s32.totalorder %s139_s1, %s88_s22  ;;  %p92_p0 = scmp.lt.u32.totalorder %s88_s22, %s139_s1 }
  0x1f   :  { %p94_p1 = pnand %p92_p0, %p89_p13 }
  0x21   :  { %97 = shalt.err (!%p94_p1)
}
  0x22   :  { %46 = dma.vmem_to_hbm [thread:$0]  %s44_s19, 512, %s139_s1, [#allocation4]  }
  0x23   :  { %100 = dma.done.wait [#allocation4], 512  }
  0x24   :  { %101 = vsyncadd [#allocation4], 4294966784 }
  0x25   :  { %50 = vsyncpa [#allocation3], 1 }
  0x26   :  { %51 = vsyncpa [#allocation4], 1 }

</bundles_post_ra>
